<compile_context>
chip_gen: v7x
topology: tpu7x:2x2x1
jax: 0.10.0
libtpu: 0.0.40
codegen_flags: <defaults>
</compile_context>

<pallas_src>
import functools

import jax
import jax.numpy as jnp
from jax.experimental import pallas as pl
from jax.experimental.pallas import tpu as pltpu

EPS = 1e-5


@functools.lru_cache(maxsize=1)
def _roll_sign() -> int:
    """One-time probe of pltpu.roll's shift convention (+1 == jnp.roll-like).

    A tiny (8, 128) kernel run once per process; it makes the tap-shift
    direction independent of the rotate convention so the conv cannot
    silently come out spatially flipped.
    """
    def kernel(x_ref, o_ref):
        o_ref[...] = pltpu.roll(x_ref[...], 1, 1)

    x = jnp.tile(jnp.arange(128, dtype=jnp.float32)[None, :], (8, 1))
    out = pl.pallas_call(
        kernel, out_shape=jax.ShapeDtypeStruct((8, 128), jnp.float32))(x)
    # jnp.roll convention: out[0, 0] == x[0, 127] == 127.
    return 1 if float(out[0, 0]) > 64.0 else -1


def resnet_block(x_nchw, w_oihw, gamma, beta, *, eps=EPS,
                 compute_dtype=jnp.bfloat16):
    """x + BN(Conv3x3(x)) with training-mode BN stats.  NCHW in / NCHW out."""
    N, C, H, W = x_nchw.shape
    HW = H * W

    # ---- layout plumbing (metadata-only; no HBM transposes of activations) --
    xf = x_nchw.reshape(N, C, HW)

    # Weight:  OIHW -> (9, Cout, Cin), tap-major, in the MXU operand dtype.
    w_taps = jnp.transpose(w_oihw, (2, 3, 0, 1)).reshape(9, C, C)
    w_taps = w_taps.astype(compute_dtype)

    # Tap shift offsets and 0/1 destination-validity edge masks, shape (9,1,HW).
    taps = [(dy, dx) for dy in (-1, 0, 1) for dx in (-1, 0, 1)]
    offsets = [dy * W + dx for dy, dx in taps]
    hh = jnp.arange(H, dtype=jnp.int32)
    ww = jnp.arange(W, dtype=jnp.int32)
    masks = jnp.stack([
        ((hh[:, None] + dy >= 0) & (hh[:, None] + dy < H) &
         (ww[None, :] + dx >= 0) & (ww[None, :] + dx < W)).reshape(HW)
        for dy, dx in taps]).astype(jnp.float32).reshape(9, 1, HW)

    sign = _roll_sign()
    # We want dest[p] = x[p + off]; under jnp.roll convention that is a roll
    # by (-off) mod HW (shift must be non-negative).
    shifts = [(-off * sign) % HW for off in offsets]

    cparams = pltpu.CompilerParams(dimension_semantics=("parallel",))

    def conv_plane(x_ref, w_ref, mask_ref):
        """3x3 conv of one image: 9 rolled+masked taps, K=C MXU matmuls
        accumulated into a (C, HW) f32 value.  Shared by both passes so the
        conv output is bit-identical (exact BN)."""
        xp = x_ref[0]                                   # (C, HW), input dtype
        acc = None
        for t in range(9):
            if offsets[t] == 0:                         # centre tap: no shift/mask
                tap = xp
            else:
                rolled = pltpu.roll(xp, shifts[t], 1)   # XLU lane rotate
                tap = rolled * mask_ref[t]              # zero invalid edge sources
            d = jnp.dot(w_ref[t], tap.astype(compute_dtype),
                        preferred_element_type=jnp.float32)
            acc = d if acc is None else acc + d
        return acc                                      # (C, HW) f32

    # -------- pass 1: conv -> per-image per-channel (sum, centered sumsq) ----
    def stats_kernel(x_ref, w_ref, mask_ref, stats_ref):
        conv = conv_plane(x_ref, w_ref, mask_ref)            # (C, HW) f32
        s = jnp.sum(conv, axis=1, keepdims=True)             # (C, 1)
        centered = conv - s * (1.0 / HW)
        stats_ref[0, :, 0:1] = s
        stats_ref[0, :, 1:2] = jnp.sum(centered * centered, axis=1,
                                       keepdims=True)

    stats = pl.pallas_call(
        stats_kernel,
        out_shape=jax.ShapeDtypeStruct((N, C, 2), jnp.float32),
        grid=(N,),
        in_specs=[
            pl.BlockSpec((1, C, HW), lambda n: (n, 0, 0)),
            pl.BlockSpec((9, C, C), lambda n: (0, 0, 0)),
            pl.BlockSpec((9, 1, HW), lambda n: (0, 0, 0)),
        ],
        out_specs=pl.BlockSpec((1, C, 2), lambda n: (n, 0, 0)),
        compiler_params=cparams,
    )(xf, w_taps, masks)

    # ---- tiny glue: Chan-style merge -> global stats -> fused scale/shift ---
    cnt = float(N * HW)
    s_img = stats[:, :, 0]                               # (N, C) per-image sums
    csq_img = stats[:, :, 1]                             # (N, C) centered sumsq
    mean_img = s_img / float(HW)
    mean = jnp.sum(s_img, axis=0) / cnt
    m2 = jnp.sum(csq_img, axis=0) + float(HW) * jnp.sum(
        (mean_img - mean[None, :]) ** 2, axis=0)
    var = m2 / cnt                                       # biased, as BN uses
    scale = gamma.astype(jnp.float32) * jax.lax.rsqrt(var + eps)
    shift = beta.astype(jnp.float32) - mean * scale
    affine = jnp.stack([scale, shift], axis=1)           # (C, 2) f32

    # ------ pass 2: conv (recomputed) -> y*scale+shift -> + residual ---------
    def norm_kernel(x_ref, w_ref, mask_ref, aff_ref, out_ref):
        conv = conv_plane(x_ref, w_ref, mask_ref)            # (C, HW) f32
        y = conv * aff_ref[:, 0:1] + aff_ref[:, 1:2]         # per-channel FMA
        out_ref[0, :, :] = (x_ref[0].astype(jnp.float32) + y).astype(out_ref.dtype)

    outf = pl.pallas_call(
        norm_kernel,
        out_shape=jax.ShapeDtypeStruct((N, C, HW), x_nchw.dtype),
        grid=(N,),
        in_specs=[
            pl.BlockSpec((1, C, HW), lambda n: (n, 0, 0)),
            pl.BlockSpec((9, C, C), lambda n: (0, 0, 0)),
            pl.BlockSpec((9, 1, HW), lambda n: (0, 0, 0)),
            pl.BlockSpec((C, 2), lambda n: (0, 0)),
        ],
        out_specs=pl.BlockSpec((1, C, HW), lambda n: (n, 0, 0)),
        compiler_params=cparams,
    )(xf, w_taps, masks, affine)

    return outf.reshape(N, C, H, W)                      # metadata-only


def ref_resnet_block(x_nchw, w_oihw, gamma, beta, eps=EPS):
    """Pure-JAX reference mirroring the PyTorch forward (training-mode BN)."""
    y = jax.lax.conv_general_dilated(
        x_nchw, w_oihw, window_strides=(1, 1), padding=[(1, 1), (1, 1)],
        dimension_numbers=("NCHW", "OIHW", "NCHW"))
    mean = jnp.mean(y, axis=(0, 2, 3), keepdims=True)
    var = jnp.mean((y - mean) ** 2, axis=(0, 2, 3), keepdims=True)
    yn = (gamma.reshape(1, -1, 1, 1) * (y - mean) * jax.lax.rsqrt(var + eps)
          + beta.reshape(1, -1, 1, 1))
    return x_nchw + yn


if __name__ == "__main__":
    key = jax.random.PRNGKey(0)
    kx, kw = jax.random.split(key)

    N, C, H, W = 2, 4, 16, 16
    x = jax.random.normal(kx, (N, C, H, W), dtype=jnp.float32)

    # Conv2d(C, C, 3, bias=False) weight, kaiming-uniform-style deterministic init.
    fan_in = C * 3 * 3
    bound = 1.0 / (fan_in ** 0.5)
    w = jax.random.uniform(kw, (C, C, 3, 3), jnp.float32,
                           minval=-bound, maxval=bound)

    # BatchNorm2d default parameter init.
    gamma = jnp.ones((C,), jnp.float32)
    beta = jnp.zeros((C,), jnp.float32)

    ref = jax.block_until_ready(ref_resnet_block(x, w, gamma, beta))

    # f32 MXU operands: exact module semantics (strict tolerance).
    out_f32 = jax.block_until_ready(
        resnet_block(x, w, gamma, beta, compute_dtype=jnp.float32))
    assert out_f32.shape == (N, C, H, W)
    err = float(jnp.max(jnp.abs(out_f32 - ref)))
    assert err < 1e-3, f"f32 path max abs err = {err}"

    # Default path: bf16 MXU operands, f32 accumulation / statistics.
    out = jax.block_until_ready(resnet_block(x, w, gamma, beta))
    assert out.shape == (N, C, H, W)
    err_bf16 = float(jnp.max(jnp.abs(out - ref)))
    assert err_bf16 < 5e-2, f"bf16 path max abs err = {err_bf16}"

    print("KERNEL_OK")
</pallas_src>

<mosaic_0001>
module attributes {stable_mosaic.version = 11 : i64} {
  func.func @kernel(%arg0: memref<8x128xf32, #tpu.memory_space<vmem>>, %arg1: memref<8x128xf32, #tpu.memory_space<vmem>>) attributes {dimension_semantics = [], scalar_prefetch = 0 : i64, scratch_operands = 0 : i64, tpu.core_type = #tpu.core_type<tc>} {
    %c0 = arith.constant 0 : index
    %c0_0 = arith.constant 0 : index
    %0 = vector.load %arg0[%c0, %c0_0] : memref<8x128xf32, #tpu.memory_space<vmem>>, vector<8x128xf32>
    %c1_i32 = arith.constant 1 : i32
    %1 = tpu.dynamic_rotate %0 by %c1_i32 dim 1 : vector<8x128xf32>, i32 -> vector<8x128xf32>
    %c0_1 = arith.constant 0 : index
    %c0_2 = arith.constant 0 : index
    %2 = vector.load %arg1[%c0_1, %c0_2] : memref<8x128xf32, #tpu.memory_space<vmem>>, vector<8x128xf32>
    tpu.vector_store %arg1[%c0_1, %c0_2], %1 {strides = array<i32>} : memref<8x128xf32, #tpu.memory_space<vmem>>, vector<8x128xf32>,
    return
  }
}

</mosaic_0001>

<bundles_post_ra>
// kernel: tpu_custom_call.1
= control target key start
LH: loop header
LB: loop body
LE: loop exit
PB: predicated region body
PF: predicated region fallthrough
CT: control target
= control target key end

     0   :  { %6 = vsyncpa [#allocation3], 0  ;;  %s128_s0 = inlined_call_operand.hbm [shape: f32[8,128], index: 0, kind: input, shape index: {}]   ;;  %s129_s1 = inlined_call_operand.hbm [shape: f32[8,128], index: 1, kind: output, shape index: {}]  }
   0x1   :  { %7 = vsyncpa [#allocation4], 0  ;;  %s91_s6 = smov [#allocation2]   ;;  %s43_s10 = scalar_lea.hbm %s128_s0, 128 }
   0x2   :  { %s14_s7 = sshll.u32 %s91_s6, 4  ;;  %p44_p0 = scmp.ne.s32.totalorder %s128_s0, %s43_s10  ;;  %s15_s7 = int_to_ptr.vmem [resolvable:$true] %s14_s7 }
   0x3   :  { %p47_p1 = scmp.lt.u32.totalorder %s43_s10, %s128_s0 }
   0x5   :  { %p49_p2 = pnand %p47_p1, %p44_p0 }
   0x7   :  { %52 = shalt.err (!%p49_p2)
}
   0x8   :  { %s53_s15 = scalar_lea.vmem %s15_s7, 128  ;;  %p58_p4 = scmp.lt.s32.totalorder %s15_s7, %s15_s7 }
   0x9   :  { %p54_p3 = scmp.ne.s32.totalorder %s15_s7, %s53_s15  ;;  %p59_p5 = scmp.lt.s32.totalorder %s53_s15, %s53_s15 }
   0xb   :  { %p60_p6 = por %p59_p5, %p58_p4 }
   0xd   :  { %p61_p7 = pnand %p60_p6, %p54_p3 }
   0xf   :  { %64 = shalt.err (!%p61_p7)
}
  0x10   :  { %17 = dma.hbm_to_vmem [thread:$0]  %s128_s0, 128, %s15_s7, [#allocation3]  }
  0x11   :  { %87 = dma.done.wait [#allocation3], 128  }
  0x12   :  { %88 = vsyncadd [#allocation3], 4294967168  ;;  %v21_v0 = vld [vmem:[#allocation2] sm:$0xff]  ;;  %s92_s18 = smov 1   ;;  %s93_s19 = smov [#allocation5]  }
  0x13   :  { %22 = vrot.lane.b32.xlu0 %v21_v0, %s92_s18  ;;  %s31_s20 = sshll.u32 %s93_s19, 4  ;;  %s32_s20 = int_to_ptr.vmem [resolvable:$true] %s31_s20 }
  0x14   :  { %s65_s21 = scalar_lea.vmem %s32_s20, 128  ;;  %p70_p9 = scmp.lt.s32.totalorder %s32_s20, %s32_s20 }
  0x15   :  { %p66_p8 = scmp.ne.s32.totalorder %s32_s20, %s65_s21  ;;  %p71_p10 = scmp.lt.s32.totalorder %s65_s21, %s65_s21 }
  0x17   :  { %p72_p11 = por %p71_p10, %p70_p9 }
  0x19   :  { %p73_p12 = pnand %p72_p11, %p66_p8 }
  0x85   :  { %v23_v1 = vpop.permute.xlu0 %22 }
  0x86   :  { %24 = vst [vmem:[#allocation5] sm:$0xff] %v23_v1 }
  0x87   :  { %76 = shalt.err (!%p73_p12)
}
  0x88   :  { %s77_s0 = scalar_lea.hbm %s129_s1, 128 }
  0x89   :  { %p78_p13 = scmp.ne.s32.totalorder %s129_s1, %s77_s0  ;;  %p81_p0 = scmp.lt.u32.totalorder %s77_s0, %s129_s1 }
  0x8b   :  { %p83_p1 = pnand %p81_p0, %p78_p13 }
  0x8d   :  { %86 = shalt.err (!%p83_p1)
}
  0x8e   :  { %34 = dma.vmem_to_hbm [thread:$0]  %s32_s20, 128, %s129_s1, [#allocation4]  }
  0x8f   :  { %89 = dma.done.wait [#allocation4], 128  }
  0x90   :  { %90 = vsyncadd [#allocation4], 4294967168 }
  0x91   :  { %38 = vsyncpa [#allocation3], 1 }
  0x92   :  { %39 = vsyncpa [#allocation4], 1 }

</bundles_post_ra>
